<compile_context>
chip_gen: v5e
topology: v5e:2x2
jax: 0.10.0
libtpu: 0.0.40
codegen_flags: <defaults>
</compile_context>

<pallas_src>
import jax
import jax.numpy as jnp
from jax.experimental import pallas as pl
from jax.experimental.pallas import tpu as pltpu

EPS = 1e-5
MAX_NORM = 1.0 - EPS          # nn.Embedding(max_norm=1-eps)
RENORM_EPS = 1e-7             # torch embedding_renorm_ epsilon
CLAMP_MIN = 1e-5              # square_norm clamp

_LANES = 128
_FUSE_MAX_TABLE_BYTES = 2 * 1024 * 1024   # double-buffered resident table budget
_FUSE_MAX_ROWS = 1024                     # bound the one-hot matmul K dimension


def _round_up(n, m):
    return ((n + m - 1) // m) * m


def _choose_rows(p, d, block_rows=None):
    """Row-block size for the pre-gathered (P, D) path."""
    if block_rows is None:
        # ~512 KiB logical bytes per input per step to amortize the ~0.35us
        # fixed per-grid-step cost; cap at 4096 rows so the (rows, D) VMEM
        # block (minor dim lane-padded to 128 for small D) stays <= 2 MiB per
        # buffer (x2 buffers x2 inputs = 8 MiB).
        br = max(256, min(4096, (512 * 1024) // (d * 4)))
    else:
        br = block_rows
    br = _round_up(br, _LANES)
    p_ru = _round_up(max(p, 1), _LANES)
    br = min(br, p_ru)
    if block_rows is None and p_ru >= 2 * _LANES:
        # keep >= 2 blocks so v7x's two TensorCores both get work
        br = min(br, _round_up((p_ru + 1) // 2, _LANES))
    br = max(br, _LANES)
    p_pad = _round_up(max(p, 1), br)
    return p_pad, br


def _choose_cols_fused(p, e, block_cols=None):
    """Lane-block size for the fused gather path."""
    if block_cols is None:
        # dominant per-step temporaries: (E, 2*bc) one-hot selection matrix
        # plus its int/bool compare precursors (~16*E*bc bytes); keep under
        # ~8 MiB for v7x's smaller VMEM.
        bc = max(512, min(8192, (8 << 20) // (16 * max(e, 1))))
    else:
        bc = block_cols
    bc = _round_up(bc, _LANES)
    p_ru = _round_up(max(p, 1), _LANES)
    bc = min(bc, p_ru)
    if block_cols is None and p_ru >= 2 * _LANES:
        bc = min(bc, _round_up((p_ru + 1) // 2, _LANES))
    bc = max(bc, _LANES)
    p_pad = _round_up(max(p, 1), bc)
    return p_pad, bc


def _poincare_math(x_t, y_t):
    """Poincare distance for column-major embeddings.

    x_t, y_t: (D, C) float32, D on sublanes, pairs on lanes.
    Returns (1, C) float32 distances (lane-dense).
    """
    # One reduction per input, reused for renorm scale AND the denominator.
    sx = jnp.sum(x_t * x_t, axis=0, keepdims=True)          # (1, C)
    sy = jnp.sum(y_t * y_t, axis=0, keepdims=True)
    nx = jnp.sqrt(sx)
    ny = jnp.sqrt(sy)
    scale_x = jnp.where(nx > MAX_NORM, MAX_NORM / (nx + RENORM_EPS), 1.0)
    scale_y = jnp.where(ny > MAX_NORM, MAX_NORM / (ny + RENORM_EPS), 1.0)
    sqn_x = jnp.maximum(sx * scale_x * scale_x, CLAMP_MIN)
    sqn_y = jnp.maximum(sy * scale_y * scale_y, CLAMP_MIN)

    diff = x_t * scale_x - y_t * scale_y
    sqn_d = jnp.maximum(jnp.sum(diff * diff, axis=0, keepdims=True), CLAMP_MIN)

    z = sqn_d / ((1.0 - sqn_x) * (1.0 - sqn_y))
    arg = 1.0 + 2.0 * z
    # torch-faithful arcosh (log(arg + sqrt(arg^2 - 1))).
    return jnp.log(arg + jnp.sqrt(arg * arg - 1.0))


def _poincare_fused_kernel(xi_ref, yi_ref, w_ref, out_ref):
    """Fused gather + distance.

    xi_ref, yi_ref: (1, C) int32 index blocks (lanes = pairs).
    w_ref:          (D, E) float32 transposed embedding table (VMEM resident).
    out_ref:        (1, C) float32 distances (lane-dense store).
    """
    w_t = w_ref[...].astype(jnp.float32)                     # (D, E)
    e = w_t.shape[1]
    xi = xi_ref[...]                                          # (1, C)
    yi = yi_ref[...]
    c = xi.shape[1]

    # Column iota (E, 1): the compare broadcasts it to (E, 2C) without ever
    # materializing an (E, C) int32 tile.  A single wide one-hot matmul
    # selects both x and y rows: (D, E) @ (E, 2C) -> (D, 2C).
    ids = jax.lax.broadcasted_iota(jnp.int32, (e, 1), 0)
    idx_cat = jnp.concatenate([xi, yi], axis=1)               # (1, 2C)
    sel = (ids == idx_cat).astype(jnp.float32)                # (E, 2C), exact 0/1
    xy = jnp.dot(w_t, sel, preferred_element_type=jnp.float32,
                 precision=jax.lax.Precision.HIGHEST)
    x_t = xy[:, :c]
    y_t = xy[:, c:]

    out_ref[...] = _poincare_math(x_t, y_t)


def _poincare_rows_kernel(x_ref, y_ref, out_ref):
    """Distance on pre-gathered row-major embeddings.

    x_ref, y_ref: (R, D) float32 (pairs on sublanes, D on lanes).
    out_ref:      (R, 1) float32.
    Reductions run over the lane axis; no in-kernel transpose is needed, so
    D does not have to be tile-aligned.  The (R, 1) output store is tiny
    (4 B/pair) compared to the 2*D*4 B/pair of reads.
    """
    x = x_ref[...].astype(jnp.float32)
    y = y_ref[...].astype(jnp.float32)

    sx = jnp.sum(x * x, axis=-1, keepdims=True)               # (R, 1)
    sy = jnp.sum(y * y, axis=-1, keepdims=True)
    nx = jnp.sqrt(sx)
    ny = jnp.sqrt(sy)
    scale_x = jnp.where(nx > MAX_NORM, MAX_NORM / (nx + RENORM_EPS), 1.0)
    scale_y = jnp.where(ny > MAX_NORM, MAX_NORM / (ny + RENORM_EPS), 1.0)
    sqn_x = jnp.maximum(sx * scale_x * scale_x, CLAMP_MIN)
    sqn_y = jnp.maximum(sy * scale_y * scale_y, CLAMP_MIN)

    diff = x * scale_x - y * scale_y
    sqn_d = jnp.maximum(jnp.sum(diff * diff, axis=-1, keepdims=True), CLAMP_MIN)

    z = sqn_d / ((1.0 - sqn_x) * (1.0 - sqn_y))
    arg = 1.0 + 2.0 * z
    out_ref[...] = jnp.log(arg + jnp.sqrt(arg * arg - 1.0))


def poincare_distance_fused(weight_t, x_idx, y_idx, *, block_cols=None):
    """weight_t: (D, E) f32.  x_idx, y_idx: (P,) int32.  Returns (P,) f32."""
    d, e = weight_t.shape
    p = x_idx.shape[0]
    p_pad, bc = _choose_cols_fused(p, e, block_cols)

    xi = jnp.pad(x_idx.astype(jnp.int32), (0, p_pad - p)).reshape(1, p_pad)
    yi = jnp.pad(y_idx.astype(jnp.int32), (0, p_pad - p)).reshape(1, p_pad)

    out = pl.pallas_call(
        _poincare_fused_kernel,
        out_shape=jax.ShapeDtypeStruct((1, p_pad), jnp.float32),
        grid=(p_pad // bc,),
        in_specs=[
            pl.BlockSpec((1, bc), lambda i: (0, i)),
            pl.BlockSpec((1, bc), lambda i: (0, i)),
            # Constant-index resident table: fetched once by the pipeline.
            pl.BlockSpec((d, e), lambda i: (0, 0)),
        ],
        out_specs=pl.BlockSpec((1, bc), lambda i: (0, i)),
        compiler_params=pltpu.CompilerParams(
            dimension_semantics=("parallel",)),
    )(xi, yi, weight_t.astype(jnp.float32))
    return out[0, :p]


def poincare_distance_rows(x_emb, y_emb, *, block_rows=None):
    """x_emb, y_emb: (P, D) gathered embeddings (row-major).  Returns (P,)."""
    p, d = x_emb.shape
    p_pad, br = _choose_rows(p, d, block_rows)
    if p_pad != p:
        # Only hit when called directly with a ragged P; the embedding wrapper
        # pads the (cheap) indices before the gather so this is a no-op there.
        x_emb = jnp.pad(x_emb, ((0, p_pad - p), (0, 0)))
        y_emb = jnp.pad(y_emb, ((0, p_pad - p), (0, 0)))

    out = pl.pallas_call(
        _poincare_rows_kernel,
        out_shape=jax.ShapeDtypeStruct((p_pad, 1), jnp.float32),
        grid=(p_pad // br,),
        in_specs=[
            pl.BlockSpec((br, d), lambda i: (i, 0)),
            pl.BlockSpec((br, d), lambda i: (i, 0)),
        ],
        out_specs=pl.BlockSpec((br, 1), lambda i: (i, 0)),
        compiler_params=pltpu.CompilerParams(
            dimension_semantics=("parallel",)),
    )(x_emb.astype(jnp.float32), y_emb.astype(jnp.float32))
    return out[:p, 0]


class PoincareEmbeddingPallas:
    """JAX/Pallas port of the PyTorch PoincareEmbedding forward pass."""

    def __init__(self, num_embeddings, embedding_dim=2, eps=1e-5, *,
                 key=None, initial_radius=0.001):
        self.eps = eps
        if key is None:
            key = jax.random.PRNGKey(0)
        # initialize_embedding(): uniform(-1,1) directions scaled to a disk
        # of radius `initial_radius`.
        u = jax.random.uniform(key, (num_embeddings, embedding_dim),
                               minval=-1.0, maxval=1.0, dtype=jnp.float32)
        nrm = jnp.linalg.norm(u, axis=-1, keepdims=True)
        self.weight = initial_radius * u / nrm            # (E, D)
        # NOTE: torch's nn.Embedding(max_norm=...) renorms the weight tensor
        # in place at lookup time; here the renorm is applied to the gathered
        # values only (same forward values, stored table left untouched).
        # TODO(synk): write the renorm back to the table to match torch's
        # in-place embedding_renorm_ side effect for training code paths.

    def __call__(self, x_idx, y_idx, *, fuse_gather=None, block_size=None):
        """x_idx, y_idx: int index arrays of identical shape.
        Returns float32 distances of the same shape."""
        assert x_idx.shape == y_idx.shape
        out_shape = x_idx.shape
        xf = x_idx.reshape(-1).astype(jnp.int32)
        yf = y_idx.reshape(-1).astype(jnp.int32)

        e, d = self.weight.shape
        if fuse_gather is None:
            # Fuse only when the table is VMEM-small AND the one-hot build
            # (~E/D x the distance math per pair) is not the dominant cost.
            fuse_gather = (2 * e * d * 4 <= _FUSE_MAX_TABLE_BYTES
                           and e <= max(256, 8 * d)
                           and e <= _FUSE_MAX_ROWS)

        if fuse_gather:
            dist = poincare_distance_fused(self.weight.T, xf, yf,
                                           block_cols=block_size)
        else:
            # Pad the INDICES (4 B/pair) instead of the gathered slabs, gather
            # row-major (no XLA-side transpose), feed (rows, D) blocks.
            p = xf.shape[0]
            p_pad, br = _choose_rows(p, d, block_size)
            xf_p = jnp.pad(xf, (0, p_pad - p))
            yf_p = jnp.pad(yf, (0, p_pad - p))
            x_emb = jnp.take(self.weight, xf_p, axis=0)    # (P_pad, D)
            y_emb = jnp.take(self.weight, yf_p, axis=0)
            dist = poincare_distance_rows(x_emb, y_emb, block_rows=br)[:p]
        return dist.reshape(out_shape)


def _reference_forward(weight, x_idx, y_idx):
    """Pure-JAX reference mirroring the PyTorch semantics."""
    def renorm(v):
        nrm = jnp.linalg.norm(v, axis=-1, keepdims=True)
        return v * jnp.where(nrm > MAX_NORM, MAX_NORM / (nrm + RENORM_EPS), 1.0)

    def sqn(v):
        return jnp.maximum(jnp.sum(v * v, axis=-1), CLAMP_MIN)

    xe = renorm(jnp.take(weight, x_idx, axis=0))
    ye = renorm(jnp.take(weight, y_idx, axis=0))
    z = sqn(xe - ye) / ((1.0 - sqn(xe)) * (1.0 - sqn(ye)))
    arg = 1.0 + 2.0 * z
    return jnp.log(arg + jnp.sqrt(arg * arg - 1.0))


if __name__ == "__main__":
    key = jax.random.PRNGKey(0)
    k_emb, k_x, k_y, k_dir, k_nrm, k_emb2 = jax.random.split(key, 6)

    num_embeddings, embedding_dim = 64, 32
    batch, num_pairs = 2, 8

    model = PoincareEmbeddingPallas(num_embeddings, embedding_dim, key=k_emb)
    x_idx = jax.random.randint(k_x, (batch, num_pairs), 0, num_embeddings,
                               dtype=jnp.int32)
    y_idx = jax.random.randint(k_y, (batch, num_pairs), 0, num_embeddings,
                               dtype=jnp.int32)

    # 1) Default tiny-radius init (clamp-dominated regime), fused gather path.
    dist = model(x_idx, y_idx)
    jax.block_until_ready(dist)
    ref = _reference_forward(model.weight, x_idx, y_idx)
    assert dist.shape == (batch, num_pairs)
    assert jnp.allclose(dist, ref, rtol=1e-5, atol=1e-6), (dist, ref)

    # 2) Well-conditioned regime (norms in [0.05, 0.9]); check fused AND the
    #    pre-gathered (row-major, no-transpose) kernel.
    dirs = jax.random.normal(k_dir, (num_embeddings, embedding_dim),
                             dtype=jnp.float32)
    dirs = dirs / jnp.linalg.norm(dirs, axis=-1, keepdims=True)
    norms_mid = jax.random.uniform(k_nrm, (num_embeddings, 1),
                                   minval=0.05, maxval=0.9, dtype=jnp.float32)
    model.weight = dirs * norms_mid
    ref_mid = _reference_forward(model.weight, x_idx, y_idx)
    d_fused = model(x_idx, y_idx, fuse_gather=True)
    d_unfused = model(x_idx, y_idx, fuse_gather=False)
    jax.block_until_ready((d_fused, d_unfused))
    assert jnp.allclose(d_fused, ref_mid, rtol=2e-4, atol=1e-5), (d_fused, ref_mid)
    assert jnp.allclose(d_unfused, ref_mid, rtol=2e-4, atol=1e-5), (d_unfused, ref_mid)

    # 3) Renorm regime (some norms > 1 so the max_norm rescale kicks in).
    #    There 1 - ||x||^2 ~ 2e-5, which amplifies harmless f32 rounding
    #    differences between the mathematically identical kernel/reference
    #    formulations (sum(x*x)*scale^2 vs sum((scale*x)^2)), so compare with
    #    a documented, looser tolerance.
    norms_big = jax.random.uniform(k_nrm, (num_embeddings, 1),
                                   minval=0.5, maxval=1.5, dtype=jnp.float32)
    model.weight = dirs * norms_big
    d_big = model(x_idx, y_idx)
    jax.block_until_ready(d_big)
    ref_big = _reference_forward(model.weight, x_idx, y_idx)
    assert jnp.allclose(d_big, ref_big, rtol=5e-2, atol=1e-3), (d_big, ref_big)

    # 4) Module default embedding_dim=2: exercises both the fused path and the
    #    D-scaled block choice for tiny D on the unfused path.
    model2 = PoincareEmbeddingPallas(32, 2, key=k_emb2, initial_radius=0.5)
    x2 = jax.random.randint(k_x, (batch, num_pairs), 0, 32, dtype=jnp.int32)
    y2 = jax.random.randint(k_y, (batch, num_pairs), 0, 32, dtype=jnp.int32)
    d2 = model2(x2, y2)
    d2_rows = model2(x2, y2, fuse_gather=False)
    jax.block_until_ready((d2, d2_rows))
    ref2 = _reference_forward(model2.weight, x2, y2)
    assert jnp.allclose(d2, ref2, rtol=1e-4, atol=1e-6), (d2, ref2)
    assert jnp.allclose(d2_rows, ref2, rtol=1e-4, atol=1e-6), (d2_rows, ref2)

    print("KERNEL_OK")
</pallas_src>

<mosaic_0001>
module attributes {stable_mosaic.version = 11 : i64} {
  func.func @_poincare_fused_kernel(%arg0: i32, %arg1: memref<1x128xi32, #tpu.memory_space<vmem>>, %arg2: memref<1x128xi32, #tpu.memory_space<vmem>>, %arg3: memref<32x64xf32, #tpu.memory_space<vmem>>, %arg4: memref<1x128xf32, #tpu.memory_space<vmem>>) attributes {dimension_semantics = [#tpu.dimension_semantics<parallel>], iteration_bounds = array<i64: 1>, scalar_prefetch = 0 : i64, scratch_operands = 0 : i64, tpu.core_type = #tpu.core_type<tc>, window_params = [{transform_indices = @transform_0, window_bounds = array<i64: 1, 128>}, {transform_indices = @transform_1, window_bounds = array<i64: 1, 128>}, {pipeline_mode = #tpu.pipeline_mode<synchronous>, transform_indices = @transform_2, window_bounds = array<i64: 32, 64>}, {transform_indices = @transform_3, window_bounds = array<i64: 1, 128>}]} {
    %c0 = arith.constant 0 : index
    %c0_0 = arith.constant 0 : index
    %0 = vector.load %arg3[%c0, %c0_0] : memref<32x64xf32, #tpu.memory_space<vmem>>, vector<32x64xf32>
    %c0_1 = arith.constant 0 : index
    %c0_2 = arith.constant 0 : index
    %1 = vector.load %arg1[%c0_1, %c0_2] : memref<1x128xi32, #tpu.memory_space<vmem>>, vector<1x128xi32>
    %c0_3 = arith.constant 0 : index
    %c0_4 = arith.constant 0 : index
    %2 = vector.load %arg2[%c0_3, %c0_4] : memref<1x128xi32, #tpu.memory_space<vmem>>, vector<1x128xi32>
    %3 = tpu.iota {dimensions = array<i32: 0>} : vector<64x1xi32>
    %4 = tpu.concatenate %1, %2 in 1 : vector<1x128xi32>, vector<1x128xi32> -> vector<1x256xi32>
    %5 = vector.broadcast %3 : vector<64x1xi32> to vector<64x256xi32>
    %6 = vector.broadcast %4 : vector<1x256xi32> to vector<64x256xi32>
    %7 = arith.cmpi eq, %5, %6 : vector<64x256xi32>
    %8 = arith.extui %7 : vector<64x256xi1> to vector<64x256xi32>
    %9 = arith.sitofp %8 : vector<64x256xi32> to vector<64x256xf32>
    %cst = arith.constant dense<0.000000e+00> : vector<32x256xf32>
    %10 = tpu.matmul %0, %9, %cst {dimension_numbers = #tpu.dot_dimension_numbers<[1], [0], [0], [1], [0, 0, 1, 1], [], []>, precision = #tpu.contract_precision<fp32>} : vector<32x64xf32>, vector<64x256xf32>, vector<32x256xf32> -> vector<32x256xf32>
    %11 = vector.extract_strided_slice %10 {offsets = [0, 0], sizes = [32, 128], strides = [1, 1]} : vector<32x256xf32> to vector<32x128xf32>
    %12 = vector.extract_strided_slice %10 {offsets = [0, 128], sizes = [32, 128], strides = [1, 1]} : vector<32x256xf32> to vector<32x128xf32>
    %13 = arith.mulf %11, %11 : vector<32x128xf32>
    %cst_5 = arith.constant dense<0.000000e+00> : vector<128xf32>
    %14 = vector.multi_reduction <add>, %13, %cst_5 [0] : vector<32x128xf32> to vector<128xf32>
    %15 = vector.shape_cast %14 : vector<128xf32> to vector<1x128xf32>
    %16 = arith.mulf %12, %12 : vector<32x128xf32>
    %cst_6 = arith.constant dense<0.000000e+00> : vector<128xf32>
    %17 = vector.multi_reduction <add>, %16, %cst_6 [0] : vector<32x128xf32> to vector<128xf32>
    %18 = vector.shape_cast %17 : vector<128xf32> to vector<1x128xf32>
    %19 = math.sqrt %15 : vector<1x128xf32>
    %20 = math.sqrt %18 : vector<1x128xf32>
    %cst_7 = arith.constant 0.999989986 : f32
    %21 = vector.broadcast %cst_7 : f32 to vector<1x128xf32>
    %22 = arith.cmpf ogt, %19, %21 : vector<1x128xf32>
    %cst_8 = arith.constant 1.000000e-07 : f32
    %23 = vector.broadcast %cst_8 : f32 to vector<1x128xf32>
    %24 = arith.addf %19, %23 : vector<1x128xf32>
    %cst_9 = arith.constant 0.999989986 : f32
    %25 = vector.broadcast %cst_9 : f32 to vector<1x128xf32>
    %26 = arith.divf %25, %24 : vector<1x128xf32>
    %cst_10 = arith.constant 1.000000e+00 : f32
    %27 = vector.broadcast %cst_10 : f32 to vector<1x128xf32>
    %28 = arith.select %22, %26, %27 : vector<1x128xi1>, vector<1x128xf32>
    %cst_11 = arith.constant 0.999989986 : f32
    %29 = vector.broadcast %cst_11 : f32 to vector<1x128xf32>
    %30 = arith.cmpf ogt, %20, %29 : vector<1x128xf32>
    %cst_12 = arith.constant 1.000000e-07 : f32
    %31 = vector.broadcast %cst_12 : f32 to vector<1x128xf32>
    %32 = arith.addf %20, %31 : vector<1x128xf32>
    %cst_13 = arith.constant 0.999989986 : f32
    %33 = vector.broadcast %cst_13 : f32 to vector<1x128xf32>
    %34 = arith.divf %33, %32 : vector<1x128xf32>
    %cst_14 = arith.constant 1.000000e+00 : f32
    %35 = vector.broadcast %cst_14 : f32 to vector<1x128xf32>
    %36 = arith.select %30, %34, %35 : vector<1x128xi1>, vector<1x128xf32>
    %37 = arith.mulf %15, %28 : vector<1x128xf32>
    %38 = arith.mulf %37, %28 : vector<1x128xf32>
    %cst_15 = arith.constant 9.99999974E-6 : f32
    %39 = vector.broadcast %cst_15 : f32 to vector<1x128xf32>
    %40 = arith.maximumf %38, %39 : vector<1x128xf32>
    %41 = arith.mulf %18, %36 : vector<1x128xf32>
    %42 = arith.mulf %41, %36 : vector<1x128xf32>
    %cst_16 = arith.constant 9.99999974E-6 : f32
    %43 = vector.broadcast %cst_16 : f32 to vector<1x128xf32>
    %44 = arith.maximumf %42, %43 : vector<1x128xf32>
    %45 = vector.broadcast %28 : vector<1x128xf32> to vector<32x128xf32>
    %46 = arith.mulf %11, %45 : vector<32x128xf32>
    %47 = vector.broadcast %36 : vector<1x128xf32> to vector<32x128xf32>
    %48 = arith.mulf %12, %47 : vector<32x128xf32>
    %49 = arith.subf %46, %48 : vector<32x128xf32>
    %50 = arith.mulf %49, %49 : vector<32x128xf32>
    %cst_17 = arith.constant dense<0.000000e+00> : vector<128xf32>
    %51 = vector.multi_reduction <add>, %50, %cst_17 [0] : vector<32x128xf32> to vector<128xf32>
    %52 = vector.shape_cast %51 : vector<128xf32> to vector<1x128xf32>
    %cst_18 = arith.constant 9.99999974E-6 : f32
    %53 = vector.broadcast %cst_18 : f32 to vector<1x128xf32>
    %54 = arith.maximumf %52, %53 : vector<1x128xf32>
    %cst_19 = arith.constant 1.000000e+00 : f32
    %55 = vector.broadcast %cst_19 : f32 to vector<1x128xf32>
    %56 = arith.subf %55, %40 : vector<1x128xf32>
    %cst_20 = arith.constant 1.000000e+00 : f32
    %57 = vector.broadcast %cst_20 : f32 to vector<1x128xf32>
    %58 = arith.subf %57, %44 : vector<1x128xf32>
    %59 = arith.mulf %56, %58 : vector<1x128xf32>
    %60 = arith.divf %54, %59 : vector<1x128xf32>
    %cst_21 = arith.constant 2.000000e+00 : f32
    %61 = vector.broadcast %cst_21 : f32 to vector<1x128xf32>
    %62 = arith.mulf %61, %60 : vector<1x128xf32>
    %cst_22 = arith.constant 1.000000e+00 : f32
    %63 = vector.broadcast %cst_22 : f32 to vector<1x128xf32>
    %64 = arith.addf %63, %62 : vector<1x128xf32>
    %65 = arith.mulf %64, %64 : vector<1x128xf32>
    %cst_23 = arith.constant 1.000000e+00 : f32
    %66 = vector.broadcast %cst_23 : f32 to vector<1x128xf32>
    %67 = arith.subf %65, %66 : vector<1x128xf32>
    %68 = math.sqrt %67 : vector<1x128xf32>
    %69 = arith.addf %64, %68 : vector<1x128xf32>
    %70 = math.log %69 : vector<1x128xf32>
    %c0_24 = arith.constant 0 : index
    %c0_25 = arith.constant 0 : index
    %71 = vector.load %arg4[%c0_24, %c0_25] : memref<1x128xf32, #tpu.memory_space<vmem>>, vector<1x128xf32>
    tpu.vector_store %arg4[%c0_24, %c0_25], %70 {strides = array<i32>} : memref<1x128xf32, #tpu.memory_space<vmem>>, vector<1x128xf32>,
    return
  }
  func.func @transform_0(%arg0: i32) -> (i32, i32) {
    %c0_i32 = arith.constant 0 : i32
    %c0_i32_0 = arith.constant 0 : i32
    return %c0_i32, %arg0 : i32, i32
  }
  func.func @transform_1(%arg0: i32) -> (i32, i32) {
    %c0_i32 = arith.constant 0 : i32
    %c0_i32_0 = arith.constant 0 : i32
    return %c0_i32, %arg0 : i32, i32
  }
  func.func @transform_2(%arg0: i32) -> (i32, i32) {
    %c0_i32 = arith.constant 0 : i32
    %c0_i32_0 = arith.constant 0 : i32
    %c0_i32_1 = arith.constant 0 : i32
    return %c0_i32, %c0_i32_0 : i32, i32
  }
  func.func @transform_3(%arg0: i32) -> (i32, i32) {
    %c0_i32 = arith.constant 0 : i32
    %c0_i32_0 = arith.constant 0 : i32
    return %c0_i32, %arg0 : i32, i32
  }
}

</mosaic_0001>

<bundles_post_ra>
// kernel: tpu_custom_call.1
= control target key start
LH: loop header
LB: loop body
LE: loop exit
PB: predicated region body
PF: predicated region fallthrough
CT: control target
= control target key end

     0   :  { %8 = vsyncpa [#allocation3], 0  ;;  %s1806_s0 = inlined_call_operand.hbm [shape: s32[1,128], index: 0, kind: input, shape index: {}]   ;;  %s1807_s1 = inlined_call_operand.hbm [shape: s32[1,128], index: 1, kind: input, shape index: {}]   ;;  %s1808_s2 = inlined_call_operand.hbm [shape: f32[32,64], index: 2, kind: input, shape index: {}]   ;;  %s1809_s3 = inlined_call_operand.hbm [shape: f32[1,128], index: 3, kind: output, shape index: {}]  }
   0x1   :  { %9 = vsyncpa [#allocation6], 0  ;;  %s27_s14 = sshll.u32 %s1807_s1, 4  ;;  %s28_s14 = int_to_ptr.hbm [resolvable:$true] %s27_s14 }
   0x2   :  { %10 = vsyncpa [#allocation4], 0  ;;  %s1161_s15 = smov [#allocation5]   ;;  %s16_s19 = sshll.u32 %s1806_s0, 4  ;;  %s17_s19 = int_to_ptr.hbm [resolvable:$true] %s16_s19 }
   0x3   :  { %s29_s16 = sshll.u32 %s1161_s15, 4  ;;  %s1162_s20 = smov [#allocation2]   ;;  %s30_s16 = int_to_ptr.vmem [resolvable:$true] %s29_s16 }
   0x4   :  { %32 = dma.hbm_to_vmem [thread:$0]  %s28_s14, 16, %s30_s16, [#allocation6]  }
   0x5   :  { %s18_s21 = sshll.u32 %s1162_s20, 4  ;;  %s37_s24 = sshll.u32 %s1808_s2, 4  ;;  %s19_s21 = int_to_ptr.vmem [resolvable:$true] %s18_s21  ;;  %s38_s24 = int_to_ptr.hbm [resolvable:$true] %s37_s24 }
   0x6   :  { %21 = dma.hbm_to_vmem [thread:$0]  %s17_s19, 16, %s19_s21, [#allocation3]  }
   0x7   :  { %s1163_s1 = smov [#allocation7]   ;;  %s1164_s26 = smov 128  }
   0x8   :  { %s39_s25 = sshll.u32 %s1163_s1, 4  ;;  %s1165_s27 = smov 8   ;;  %s40_s25 = int_to_ptr.vmem [resolvable:$true] %s39_s25 }
   0x9   :  { %45 = dma.hbm_to_vmem [thread:$0]  %s38_s24, 512, %s40_s25, [#allocation6], %s1164_s26, %s1164_s26, %s1165_s27  }
   0xa   :  { %1155 = dma.done.wait [#allocation3], 16  }
   0xb   :  { %1156 = vsyncadd [#allocation3], 4294967280 }
   0xc   :  { %1157 = dma.done.wait [#allocation6], 528  }
   0xd   :  { %1158 = vsyncadd [#allocation6], 4294966768  ;;  %v64_v0 = vlaneseq  ;;  %vm123_vm0 = vcmask 523264   ;;  %v1215_v7 = vld [vmem:[#allocation2] ss:$0 sm:$0xff]  ;;  %v58_v9 = vld [vmem:[#allocation7] sm:$0xff] }
   0xe   :  { %v125_v11 = vsel %vm123_vm0, %v58_v9, 0  ;;  %v1166_v12 = vmov 1.0   ;;  %v1167_v13 = vmov 0.0   ;;  %v1319_v34 = vld [vmem:[#allocation5] ss:$0 sm:$0xff]  ;;  %v59_v47 = vld [vmem:[#allocation7 + $0x8] sm:$0xff] }
   0xf   :  { %v1198_v1 = vshrl.u32 %v64_v0, 7  ;;  %v1298_v27 = vand.u32 4294901760, %v125_v11  ;;  %v128_v57 = vsel %vm123_vm0, %v59_v47, 0  ;;  %v60_v59 = vld [vmem:[#allocation7 + $0x10] sm:$0xff]  ;;  %s1168_s0 = smov [#allocation8]   ;;  %s959_s30 = sshll.u32 %s1809_s3, 4  ;;  %s960_s30 = int_to_ptr.hbm [resolvable:$true] %s959_s30 }
  0x10   :  { %v1401_v62 = vand.u32 4294901760, %v128_v57  ;;  %s957_s2 = sshll.u32 %s1168_s0, 4  ;;  %s958_s2 = int_to_ptr.vmem [resolvable:$true] %s957_s2 }
  0x11   :  { %v1201_v2 = vadd.s32 56, %v1198_v1  ;;  %v1204_v3 = vadd.s32 48, %v1198_v1  ;;  %v1207_v4 = vadd.s32 40, %v1198_v1  ;;  %v1210_v5 = vadd.s32 32, %v1198_v1 }
  0x12   :  { %v1213_v6 = vadd.s32 24, %v1198_v1  ;;  %v1218_v8 = vadd.s32 16, %v1198_v1  ;;  %v1221_v10 = vadd.s32 8, %v1198_v1  ;;  %vm75_vm8 = vcmp.eq.s32.totalorder %v1198_v1, %v1215_v7 }
  0x13   :  { %vm89_vm1 = vcmp.eq.s32.totalorder %v1201_v2, %v1215_v7  ;;  %vm87_vm2 = vcmp.eq.s32.totalorder %v1204_v3, %v1215_v7  ;;  %vm85_vm3 = vcmp.eq.s32.totalorder %v1207_v4, %v1215_v7  ;;  %vm83_vm4 = vcmp.eq.s32.totalorder %v1210_v5, %v1215_v7 }
  0x14   :  { %986 = vmatpush.msk.msra.mxu0 %vm89_vm1, %v1166_v12  ;;  %v984_v14 = vsel %vm89_vm1, 1.0, %v1167_v13  ;;  %994 = vmatpush.msk.msra.mxu3 %vm89_vm1, %v1166_v12  ;;  %v982_v15 = vsel %vm87_vm2, 1.0, %v1167_v13  ;;  %vm81_vm5 = vcmp.eq.s32.totalorder %v1213_v6, %v1215_v7  ;;  %v980_v16 = vsel %vm85_vm3, 1.0, %v1167_v13 }
  0x15   :  { %v1254_v17 = vsub.f32 %v984_v14, %v984_v14  ;;  %v1256_v18 = vsub.f32 %v982_v15, %v982_v15  ;;  %v1258_v19 = vsub.f32 %v980_v16, %v980_v16  ;;  %vm79_vm6 = vcmp.eq.s32.totalorder %v1218_v8, %v1215_v7 }
  0x16   :  { %987 = vmatpush.msk.msra.mxu0 %vm87_vm2, %v1166_v12  ;;  %995 = vmatpush.msk.msra.mxu3 %vm87_vm2, %v1166_v12  ;;  %v978_v20 = vsel %vm83_vm4, 1.0, %v1167_v13  ;;  %vm77_vm7 = vcmp.eq.s32.totalorder %v1221_v10, %v1215_v7  ;;  %v976_v21 = vsel %vm81_vm5, 1.0, %v1167_v13  ;;  %v974_v28 = vsel %vm79_vm6, 1.0, %v1167_v13 }
  0x17   :  { %276 = vmatpush.msra.mxu2 %v1254_v17  ;;  %v203_v22 = vand.u32 4294901760, %v1254_v17  ;;  %v209_v23 = vand.u32 4294901760, %v1256_v18  ;;  %v1285_v24 = vsub.f32 %v978_v20, %v978_v20  ;;  %v215_v25 = vand.u32 4294901760, %v1258_v19 }
  0x18   :  { %988 = vmatpush.msk.msra.mxu0 %vm85_vm3, %v1166_v12  ;;  %996 = vmatpush.msk.msra.mxu3 %vm85_vm3, %v1166_v12  ;;  %v1296_v26 = vsub.f32 %v976_v21, %v976_v21  ;;  %v972_v29 = vsel %vm77_vm7, 1.0, %v1167_v13  ;;  %v1330_v35 = vsub.f32 %v125_v11, %v1298_v27  ;;  %v1332_v36 = vsub.f32 %v974_v28, %v974_v28 }
  0x19   :  { %279 = vmatpush.msra.mxu2 %v1256_v18  ;;  %v204_v30 = vsub.f32 %v1254_v17, %v203_v22  ;;  %v210_v31 = vsub.f32 %v1256_v18, %v209_v23  ;;  %v216_v32 = vsub.f32 %v1258_v19, %v215_v25  ;;  %v221_v33 = vand.u32 4294901760, %v1285_v24 }
  0x1a   :  { %989 = vmatpush.msk.msra.mxu0 %vm83_vm4, %v1166_v12  ;;  %997 = vmatpush.msk.msra.mxu3 %vm83_vm4, %v1166_v12  ;;  %v227_v37 = vand.u32 4294901760, %v1296_v26  ;;  %v1335_v38 = vsub.f32 %v972_v29, %v972_v29  ;;  %v1350_v43 = vand.u32 4294901760, %v1330_v35  ;;  %v233_v45 = vand.u32 4294901760, %v1332_v36 }
  0x1b   :  { %v205_v39 = vand.u32 4294901760, %v204_v30  ;;  %282 = vmatpush.msra.mxu2 %v1258_v19  ;;  %v211_v40 = vand.u32 4294901760, %v210_v31  ;;  %v217_v41 = vand.u32 4294901760, %v216_v32  ;;  %v222_v42 = vsub.f32 %v1285_v24, %v221_v33 }
  0x1c   :  { %990 = vmatpush.msk.msra.mxu0 %vm81_vm5, %v1166_v12  ;;  %998 = vmatpush.msk.msra.mxu3 %vm81_vm5, %v1166_v12  ;;  %v228_v44 = vsub.f32 %v1296_v26, %v227_v37  ;;  %v970_v46 = vsel %vm75_vm8, 1.0, %v1167_v13  ;;  %vm90_vm9 = vcmp.eq.s32.totalorder %v1201_v2, %v1319_v34  ;;  %v239_v50 = vand.u32 4294901760, %v1335_v38 }
  0x1d   :  { %206 = vmatpush.msra.mxu1 %v205_v39  ;;  %285 = vmatpush.msra.mxu2 %v1285_v24  ;;  %v223_v48 = vand.u32 4294901760, %v222_v42  ;;  %v1361_v49 = vsub.f32 %v970_v46, %v970_v46  ;;  %v163_v51 = vsub.f32 %v1330_v35, %v1350_v43  ;;  %v234_v53 = vsub.f32 %v1332_v36, %v233_v45  ;;  %v61_v39 = vld [vmem:[#allocation7 + $0x18] sm:$0xff] }
  0x1e   :  { %991 = vmatpush.msk.msra.mxu0 %vm79_vm6, %v1166_v12  ;;  %999 = vmatpush.msk.msra.mxu3 %vm79_vm6, %v1166_v12  ;;  %v229_v52 = vand.u32 4294901760, %v228_v44  ;;  %v985_v54 = vsel %vm90_vm9, 1.0, %v1167_v13  ;;  %v240_v55 = vsub.f32 %v1335_v38, %v239_v50  ;;  %vm88_vm10 = vcmp.eq.s32.totalorder %v1204_v3, %v1319_v34 }
  0x1f   :  { %212 = vmatpush.msra.mxu1 %v211_v40  ;;  %288 = vmatpush.msra.mxu2 %v1296_v26  ;;  %v1387_v56 = vsub.f32 %v985_v54, %v985_v54  ;;  %v245_v58 = vand.u32 4294901760, %v1361_v49  ;;  %v1395_v60 = vand.u32 4294901760, %v163_v51  ;;  %v235_v61 = vand.u32 4294901760, %v234_v53 }
  0x20   :  { %992 = vmatpush.msk.msra.mxu0 %vm77_vm7, %v1166_v12  ;;  %1000 = vmatpush.msk.msra.mxu3 %vm77_vm7, %v1166_v12  ;;  %v241_v63 = vand.u32 4294901760, %v240_v55  ;;  %v983_v11 = vsel %vm88_vm10, 1.0, %v1167_v13  ;;  %v1423_v14 = vsub.f32 %v128_v57, %v1401_v62  ;;  %vm86_vm11 = vcmp.eq.s32.totalorder %v1207_v4, %v1319_v34 }
  0x21   :  { %218 = vmatpush.msra.mxu1 %v217_v41  ;;  %291 = vmatpush.msra.mxu2 %v1332_v36  ;;  %v533_v0 = vand.u32 4294901760, %v1387_v56  ;;  %v246_v9 = vsub.f32 %v1361_v49, %v245_v58  ;;  %v1425_v15 = vsub.f32 %v983_v11, %v983_v11  ;;  %v131_v16 = vsel %vm123_vm0, %v60_v59, 0 }
  0x22   :  { %993 = vmatpush.msk.msra.mxu0 %vm75_vm8, %v1166_v12  ;;  %1001 = vmatpush.msk.msra.mxu3 %vm75_vm8, %v1166_v12  ;;  %v981_v28 = vsel %vm86_vm11, 1.0, %v1167_v13  ;;  %v1438_v29 = vand.u32 4294901760, %v131_v16  ;;  %v1443_v30 = vand.u32 4294901760, %v1423_v14  ;;  %vm84_vm12 = vcmp.eq.s32.totalorder %v1210_v5, %v1319_v34 }
  0x23   :  { %165 = vmatmul.f32.vlgmr.msra.gmra.mxu0 %v1395_v60  ;;  %224 = vmatpush.msra.mxu1 %v223_v48  ;;  %v534_v20 = vsub.f32 %v1387_v56, %v533_v0  ;;  %v247_v21 = vand.u32 4294901760, %v246_v9  ;;  %v539_v31 = vand.u32 4294901760, %v1425_v15  ;;  %v1446_v32 = vsub.f32 %v981_v28, %v981_v28 }
  0x24   :  { %294 = vmatpush.msra.mxu2 %v1335_v38  ;;  %346 = vmatmul.f32.vlgmr.msra.gmra.mxu3 %v1350_v43  ;;  %v1453_v41 = vsub.f32 %v131_v16, %v1438_v29  ;;  %v979_v42 = vsel %vm84_vm12, 1.0, %v1167_v13  ;;  %vm82_vm13 = vcmp.eq.s32.totalorder %v1213_v6, %v1319_v34  ;;  %v171_v44 = vsub.f32 %v1423_v14, %v1443_v30 }
  0x25   :  { %230 = vmatpush.msra.mxu1 %v229_v52  ;;  %379 = vmatpush.msrb.mxu0 %v203_v22  ;;  %v535_v40 = vand.u32 4294901760, %v534_v20  ;;  %v540_v17 = vsub.f32 %v1425_v15, %v539_v31  ;;  %v545_v22 = vand.u32 4294901760, %v1446_v32  ;;  %v1468_v46 = vsub.f32 %v979_v42, %v979_v42 }
  0x26   :  { %297 = vmatpush.msra.mxu2 %v1361_v49  ;;  %v1472_v47 = vand.u32 4294901760, %v1453_v41  ;;  %v977_v48 = vsel %vm82_vm13, 1.0, %v1167_v13  ;;  %v134_v51 = vsel %vm123_vm0, %v61_v39, 0  ;;  %vm80_vm14 = vcmp.eq.s32.totalorder %v1218_v8, %v1319_v34 }
  0x27   :  { %236 = vmatpush.msra.mxu1 %v235_v61  ;;  %300 = vmatmul.f32.vlgmr.msra.gmra.mxu2 %v1330_v35  ;;  %v1485_v52 = vand.u32 4294901760, %v171_v44  ;;  %v541_v53 = vand.u32 4294901760, %v540_v17  ;;  %v546_v54 = vsub.f32 %v1446_v32, %v545_v22  ;;  %v551_v55 = vand.u32 4294901760, %v1468_v46 }
  0x28   :  { %1010 = vmatpush.msk.msrb.mxu2 %vm90_vm9, %v1166_v12  ;;  %536 = vmatpush.msrb.mxu3 %v535_v40  ;;  %v1493_v57 = vsub.f32 %v977_v48, %v977_v48  ;;  %v1495_v59 = vand.u32 4294901760, %v134_v51  ;;  %v975_v61 = vsel %vm80_vm14, 1.0, %v1167_v13  ;;  %vm78_vm15 = vcmp.eq.s32.totalorder %v1221_v10, %v1319_v34 }
  0x29   :  { %242 = vmatpush.msra.mxu1 %v241_v63  ;;  %383 = vmatpush.msrb.mxu0 %v209_v23  ;;  %v547_v9 = vand.u32 4294901760, %v546_v54  ;;  %v552_v18 = vsub.f32 %v1468_v46, %v551_v55  ;;  %v1508_v23 = vsub.f32 %v975_v61, %v975_v61  ;;  %v179_v63 = vsub.f32 %v1453_v41, %v1472_v47 }
  0x2a   :  { %1011 = vmatpush.msk.msrb.mxu2 %vm88_vm10, %v1166_v12  ;;  %542 = vmatpush.msrb.mxu3 %v541_v53  ;;  %v557_v11 = vand.u32 4294901760, %v1493_v57  ;;  %v1517_v16 = vsub.f32 %v134_v51, %v1495_v59  ;;  %v973_v20 = vsel %vm78_vm15, 1.0, %v1167_v13  ;;  %vm76_vm0 = vcmp.eq.s32.totalorder %v1198_v1, %v1319_v34 }
  0x2b   :  { %173 = vmatmul.f32.gmra.mxu0 %v1485_v52  ;;  %248 = vmatpush.msra.mxu1 %v247_v21  ;;  %v563_v28 = vand.u32 4294901760, %v1508_v23  ;;  %v1526_v21 = vsub.f32 %v973_v20, %v973_v20  ;;  %v553_v39 = vand.u32 4294901760, %v552_v18  ;;  %v971_v42 = vsel %vm76_vm0, 1.0, %v1167_v13 }
  0x2c   :  { %250 = vmatmul.f32.vlgmr.msra.gmra.mxu1 %v1298_v27  ;;  %352 = vmatmul.f32.gmra.mxu3 %v1443_v30  ;;  %v558_v40 = vsub.f32 %v1493_v57, %v557_v11  ;;  %v1548_v17 = vsub.f32 %v971_v42, %v971_v42  ;;  %v1555_v48 = vand.u32 4294901760, %v179_v63  ;;  %v1558_v51 = vand.u32 4294901760, %v1517_v16 }
  0x2d   :  { %1002 = vmatpush.msk.msrb.mxu1 %vm89_vm1, %v1166_v12  ;;  %1012 = vmatpush.msk.msrb.mxu2 %vm86_vm11, %v1166_v12  ;;  %v569_v44 = vand.u32 4294901760, %v1526_v21  ;;  %v564_v13 = vsub.f32 %v1508_v23, %v563_v28 }
  0x2e   :  { %387 = vmatpush.msrb.mxu0 %v215_v25  ;;  %548 = vmatpush.msrb.mxu3 %v547_v9  ;;  %v559_v19 = vand.u32 4294901760, %v558_v40  ;;  %v575_v53 = vand.u32 4294901760, %v1548_v17  ;;  %v187_v24 = vsub.f32 %v1517_v16, %v1558_v51 }
  0x2f   :  { %305 = vmatmul.f32.gmra.mxu2 %v1423_v14  ;;  %1003 = vmatpush.msk.msrb.mxu1 %vm87_vm2, %v1166_v12  ;;  %v570_v25 = vsub.f32 %v1526_v21, %v569_v44 }
  0x30   :  { %1013 = vmatpush.msk.msrb.mxu2 %vm84_vm12, %v1166_v12  ;;  %391 = vmatpush.msrb.mxu0 %v221_v33  ;;  %v565_v33 = vand.u32 4294901760, %v564_v13  ;;  %v188_v54 = vand.u32 4294901760, %v187_v24 }
  0x31   :  { %1004 = vmatpush.msk.msrb.mxu1 %vm85_vm3, %v1166_v12  ;;  %554 = vmatpush.msrb.mxu3 %v553_v39  ;;  %v571_v26 = vand.u32 4294901760, %v570_v25 }
  0x32   :  { %1014 = vmatpush.msk.msrb.mxu2 %vm82_vm13, %v1166_v12  ;;  %395 = vmatpush.msrb.mxu0 %v227_v37  ;;  %v576_v37 = vsub.f32 %v1548_v17, %v575_v53 }
  0x33   :  { %181 = vmatmul.f32.gmra.mxu0 %v1555_v48  ;;  %1005 = vmatpush.msk.msrb.mxu1 %vm83_vm4, %v1166_v12 }
  0x34   :  { %254 = vmatmul.f32.gmra.mxu1 %v1401_v62  ;;  %358 = vmatmul.f32.gmra.mxu3 %v1472_v47  ;;  %v577_v36 = vand.u32 4294901760, %v576_v37 }
  0x35   :  { %560 = vmatpush.msrb.mxu3 %v559_v19  ;;  %1006 = vmatpush.msk.msrb.mxu1 %vm81_vm5, %v1166_v12 }
  0x36   :  { %1015 = vmatpush.msk.msrb.mxu2 %vm80_vm14, %v1166_v12  ;;  %399 = vmatpush.msrb.mxu0 %v233_v45 }
  0x37   :  { %310 = vmatmul.f32.gmra.mxu2 %v1453_v41  ;;  %566 = vmatpush.msrb.mxu3 %v565_v33 }
  0x38   :  { %403 = vmatpush.msrb.mxu0 %v239_v50  ;;  %1007 = vmatpush.msk.msrb.mxu1 %vm79_vm6, %v1166_v12 }
  0x39   :  { %1016 = vmatpush.msk.msrb.mxu2 %vm78_vm15, %v1166_v12  ;;  %572 = vmatpush.msrb.mxu3 %v571_v26 }
  0x3a   :  { %407 = vmatpush.msrb.mxu0 %v245_v58  ;;  %1008 = vmatpush.msk.msrb.mxu1 %vm77_vm7, %v1166_v12 }
  0x3b   :  { %189 = vmatmul.f32.gmra.mxu0 %v188_v54  ;;  %1017 = vmatpush.msk.msrb.mxu2 %vm76_vm0, %v1166_v12 }
  0x3c   :  { %258 = vmatmul.f32.gmra.mxu1 %v1438_v29  ;;  %364 = vmatmul.f32.gmra.mxu3 %v1558_v51 }
  0x3d   :  { %578 = vmatpush.msrb.mxu3 %v577_v36  ;;  %1009 = vmatpush.msk.msrb.mxu1 %vm75_vm8, %v1166_v12 }
  0x3e   :  { %709 = vmatpush.msra.mxu2 %v533_v0  ;;  %606 = vmatpush.msra.mxu0 %v1387_v56 }
  0x3f   :  { %315 = vmatmul.f32.gmra.mxu2 %v1517_v16  ;;  %1026 = vmatpush.msk.msra.mxu3 %vm90_vm9, %v1166_v12 }
  0x40   :  { %1018 = vmatpush.msk.msra.mxu1 %vm90_vm9, %v1166_v12  ;;  %713 = vmatpush.msra.mxu2 %v539_v31 }
  0x41   :  { %609 = vmatpush.msra.mxu0 %v1425_v15  ;;  %1027 = vmatpush.msk.msra.mxu3 %vm88_vm10, %v1166_v12 }
  0x42   :  { %1019 = vmatpush.msk.msra.mxu1 %vm88_vm10, %v1166_v12  ;;  %717 = vmatpush.msra.mxu2 %v545_v22 }
  0x43   :  { %409 = vmatmul.f32.vlgmr.msrb.gmra.mxu0 %v1298_v27  ;;  %1028 = vmatpush.msk.msra.mxu3 %vm86_vm11, %v1166_v12 }
  0x44   :  { %262 = vmatmul.f32.gmra.mxu1 %v1495_v59  ;;  %580 = vmatmul.f32.vlgmr.msrb.gmra.mxu3 %v1298_v27 }
  0x45   :  { %612 = vmatpush.msra.mxu0 %v1446_v32  ;;  %1020 = vmatpush.msk.msra.mxu1 %vm86_vm11, %v1166_v12 }
  0x46   :  { %721 = vmatpush.msra.mxu2 %v551_v55  ;;  %1029 = vmatpush.msk.msra.mxu3 %vm84_vm12, %v1166_v12 }
  0x47   :  { %495 = vmatmul.f32.vlgmr.msrb.gmra.mxu2 %v1395_v60  ;;  %615 = vmatpush.msra.mxu0 %v1468_v46 }
  0x48   :  { %1021 = vmatpush.msk.msra.mxu1 %vm84_vm12, %v1166_v12  ;;  %725 = vmatpush.msra.mxu2 %v557_v11 }
  0x49   :  { %618 = vmatpush.msra.mxu0 %v1493_v57  ;;  %1030 = vmatpush.msk.msra.mxu3 %vm82_vm13, %v1166_v12 }
  0x4a   :  { %1022 = vmatpush.msk.msra.mxu1 %vm82_vm13, %v1166_v12  ;;  %729 = vmatpush.msra.mxu2 %v563_v28 }
  0x4b   :  { %413 = vmatmul.f32.gmra.mxu0 %v1401_v62  ;;  %1031 = vmatpush.msk.msra.mxu3 %vm80_vm14, %v1166_v12 }
  0x4c   :  { %450 = vmatmul.f32.vlgmr.msrb.gmra.mxu1 %v1298_v27  ;;  %584 = vmatmul.f32.gmra.mxu3 %v1401_v62 }
  0x4d   :  { %621 = vmatpush.msra.mxu0 %v1508_v23  ;;  %1023 = vmatpush.msk.msra.mxu1 %vm80_vm14, %v1166_v12 }
  0x4e   :  { %733 = vmatpush.msra.mxu2 %v569_v44  ;;  %1032 = vmatpush.msk.msra.mxu3 %vm78_vm15, %v1166_v12 }
  0x4f   :  { %503 = vmatmul.f32.gmra.mxu2 %v1485_v52  ;;  %624 = vmatpush.msra.mxu0 %v1526_v21 }
  0x50   :  { %1024 = vmatpush.msk.msra.mxu1 %vm78_vm15, %v1166_v12  ;;  %737 = vmatpush.msra.mxu2 %v575_v53 }
  0x51   :  { %627 = vmatpush.msra.mxu0 %v1548_v17  ;;  %1033 = vmatpush.msk.msra.mxu3 %vm76_vm0, %v1166_v12 }
  0x52   :  { %1025 = vmatpush.msk.msra.mxu1 %vm76_vm0, %v1166_v12 }
  0x53   :  { %417 = vmatmul.f32.gmra.mxu0 %v1438_v29 }
  0x54   :  { %454 = vmatmul.f32.gmra.mxu1 %v1401_v62  ;;  %588 = vmatmul.f32.gmra.mxu3 %v1438_v29 }
  0x57   :  { %511 = vmatmul.f32.gmra.mxu2 %v1555_v48 }
  0x5b   :  { %421 = vmatmul.f32.gmra.mxu0 %v1495_v59 }
  0x5c   :  { %458 = vmatmul.f32.gmra.mxu1 %v1438_v29  ;;  %592 = vmatmul.f32.gmra.mxu3 %v1495_v59 }
  0x5f   :  { %519 = vmatmul.f32.gmra.mxu2 %v188_v54 }
  0x63   :  { %630 = vmatmul.f32.vlgmr.msra.gmra.mxu0 %v1330_v35 }
  0x64   :  { %462 = vmatmul.f32.gmra.mxu1 %v1495_v59  ;;  %780 = vmatmul.f32.vlgmr.msra.gmra.mxu3 %v1298_v27 }
  0x67   :  { %739 = vmatmul.f32.vlgmr.msra.gmra.mxu2 %v1298_v27 }
  0x6b   :  { %635 = vmatmul.f32.gmra.mxu0 %v1423_v14 }
  0x6c   :  { %676 = vmatmul.f32.vlgmr.msra.gmra.mxu1 %v1350_v43  ;;  %784 = vmatmul.f32.gmra.mxu3 %v1401_v62 }
  0x6f   :  { %743 = vmatmul.f32.gmra.mxu2 %v1401_v62 }
  0x73   :  { %640 = vmatmul.f32.gmra.mxu0 %v1453_v41 }
  0x74   :  { %682 = vmatmul.f32.gmra.mxu1 %v1443_v30  ;;  %788 = vmatmul.f32.gmra.mxu3 %v1438_v29 }
  0x77   :  { %747 = vmatmul.f32.gmra.mxu2 %v1438_v29 }
  0x7b   :  { %645 = vmatmul.f32.gmra.mxu0 %v1517_v16 }
  0x7c   :  { %688 = vmatmul.f32.gmra.mxu1 %v1472_v47  ;;  %792 = vmatmul.f32.gmra.mxu3 %v1495_v59 }
  0x7f   :  { %751 = vmatmul.f32.gmra.mxu2 %v1495_v59 }
  0x84   :  { %694 = vmatmul.f32.gmra.mxu1 %v1558_v51 }
  0xa0   :  { %v166_v1 = vpop.f32.mrf.mxu0 }
  0xa7   :  { %v347_v2 = vpop.f32.mrf.mxu3 }
  0xa8   :  { %v174_v3 = vpop.f32.mrf.mxu0 }
  0xa9   :  { %v251_v4 = vpop.f32.mrf.mxu1 }
  0xaa   :  { %v252_v5 = vadd.f32 %v251_v4, %v166_v1  ;;  %v301_v6 = vpop.f32.mrf.mxu2 }
  0xac   :  { %v302_v7 = vadd.f32 %v301_v6, %v252_v5 }
  0xae   :  { %v348_v8 = vadd.f32 %v347_v2, %v302_v7 }
  0xaf   :  { %v353_v10 = vpop.f32.mrf.mxu3 }
  0xb0   :  { %v182_v12 = vpop.f32.mrf.mxu0 }
  0xb1   :  { %v255_v27 = vpop.f32.mrf.mxu1 }
  0xb2   :  { %v256_v34 = vadd.f32 %v255_v27, %v174_v3  ;;  %v306_v35 = vpop.f32.mrf.mxu2 }
  0xb4   :  { %v307_v38 = vadd.f32 %v306_v35, %v256_v34 }
  0xb6   :  { %v354_v43 = vadd.f32 %v353_v10, %v307_v38 }
  0xb7   :  { %v359_v45 = vpop.f32.mrf.mxu3 }
  0xb8   :  { %v190_v49 = vpop.f32.mrf.mxu0 }
  0xb9   :  { %v259_v50 = vpop.f32.mrf.mxu1 }
  0xba   :  { %v260_v56 = vadd.f32 %v259_v50, %v182_v12  ;;  %v311_v58 = vpop.f32.mrf.mxu2 }
  0xbc   :  { %v312_v60 = vadd.f32 %v311_v58, %v260_v56 }
  0xbe   :  { %v360_v62 = vadd.f32 %v359_v45, %v312_v60 }
  0xbf   :  { %v365_v0 = vpop.f32.mrf.mxu3 }
  0xc0   :  { %v410_v14 = vpop.f32.mrf.mxu0 }
  0xc1   :  { %v263_v15 = vpop.f32.mrf.mxu1  ;;  %v411_v22 = vadd.f32 %v410_v14, %v348_v8 }
  0xc2   :  { %v316_v29 = vpop.f32.mrf.mxu2  ;;  %v264_v23 = vadd.f32 %v263_v15, %v190_v49 }
  0xc4   :  { %v317_v21 = vadd.f32 %v316_v29, %v264_v23 }
  0xc6   :  { %v366_v44 = vadd.f32 %v365_v0, %v317_v21 }
  0xc7   :  { %v581_v30 = vpop.f32.mrf.mxu3 }
  0xc8   :  { %v414_v31 = vpop.f32.mrf.mxu0 }
  0xc9   :  { %v451_v32 = vpop.f32.mrf.mxu1  ;;  %v415_v47 = vadd.f32 %v414_v31, %v354_v43 }
  0xca   :  { %v496_v41 = vpop.f32.mrf.mxu2  ;;  %v1753_v52 = vadd.f32 %v451_v32, %v411_v22 }
  0xcb   :  { %v582_v34 = vadd.f32 %v581_v30, %v496_v41 }
  0xcc   :  { %v796_v9 = vmul.f32 %v1753_v52, %v1753_v52 }
  0xcf   :  { %v585_v46 = vpop.f32.mrf.mxu3 }
  0xd0   :  { %v418_v55 = vpop.f32.mrf.mxu0 }
  0xd1   :  { %v455_v57 = vpop.f32.mrf.mxu1  ;;  %v419_v16 = vadd.f32 %v418_v55, %v360_v62 }
  0xd2   :  { %v1755_v59 = vadd.f32 %v455_v57, %v415_v47  ;;  %v504_v61 = vpop.f32.mrf.mxu2 }
  0xd3   :  { %v586_v8 = vadd.f32 %v585_v46, %v504_v61 }
  0xd4   :  { %v797_v18 = vmul.f32 %v1755_v59, %v1755_v59 }
  0xd6   :  { %v800_v63 = vadd.f32 %v797_v18, %v796_v9 }
  0xd7   :  { %v589_v11 = vpop.f32.mrf.mxu3 }
  0xd8   :  { %v422_v20 = vpop.f32.mrf.mxu0 }
  0xd9   :  { %v459_v28 = vpop.f32.mrf.mxu1  ;;  %v423_v51 = vadd.f32 %v422_v20, %v366_v44 }
  0xda   :  { %v1761_v39 = vadd.f32 %v459_v28, %v419_v16  ;;  %v512_v40 = vpop.f32.mrf.mxu2 }
  0xdb   :  { %v590_v38 = vadd.f32 %v589_v11, %v512_v40 }
  0xdc   :  { %v798_v42 = vmul.f32 %v1761_v39, %v1761_v39 }
  0xde   :  { %v801_v17 = vadd.f32 %v800_v63, %v798_v42 }
  0xdf   :  { %v593_v48 = vpop.f32.mrf.mxu3 }
  0xe0   :  { %v631_v13 = vpop.f32.mrf.mxu0 }
  0xe1   :  { %v463_v19 = vpop.f32.mrf.mxu1  ;;  %v632_v43 = vadd.f32 %v631_v13, %v582_v34 }
  0xe2   :  { %v1765_v25 = vadd.f32 %v463_v19, %v423_v51  ;;  %v520_v53 = vpop.f32.mrf.mxu2 }
  0xe3   :  { %v594_v41 = vadd.f32 %v593_v48, %v520_v53 }
  0xe4   :  { %v799_v24 = vmul.f32 %v1765_v25, %v1765_v25 }
  0xe6   :  { %v802_v33 = vadd.f32 %v801_v17, %v799_v24 }
  0xe7   :  { %v781_v26 = vpop.f32.mrf.mxu3 }
  0xe8   :  { %v803_v37 = vrot.slane %v802_v33, 4  ;;  %v636_v54 = vpop.f32.mrf.mxu0 }
  0xe9   :  { %v677_v36 = vpop.f32.mrf.mxu1  ;;  %v637_v35 = vadd.f32 %v636_v54, %v586_v8 }
  0xea   :  { %v804_v1 = vadd.f32 %v803_v37, %v802_v33  ;;  %v740_v2 = vpop.f32.mrf.mxu2  ;;  %v678_v49 = vadd.f32 %v677_v36, %v632_v43 }
  0xec   :  { %v805_v3 = vrot.slane %v804_v1, 2  ;;  %v741_v29 = vadd.f32 %v740_v2, %v678_v49 }
  0xee   :  { %v806_v4 = vadd.f32 %v805_v3, %v804_v1  ;;  %v1775_v47 = vadd.f32 %v781_v26, %v741_v29 }
  0xef   :  { %v785_v5 = vpop.f32.mrf.mxu3 }
  0xf0   :  { %v807_v6 = vrot.slane %v806_v4, 1  ;;  %v641_v27 = vpop.f32.mrf.mxu0  ;;  %v809_v20 = vmul.f32 %v1775_v47, %v1775_v47 }
  0xf1   :  { %v683_v7 = vpop.f32.mrf.mxu1  ;;  %v642_v50 = vadd.f32 %v641_v27, %v590_v38 }
  0xf2   :  { %v1769_v10 = vadd.f32 %v807_v6, %v806_v4  ;;  %v744_v12 = vpop.f32.mrf.mxu2  ;;  %v684_v45 = vadd.f32 %v683_v7, %v637_v35 }
  0xf4   :  { %1045 = vrsqrt.f32 %v1769_v10  ;;  %v745_v62 = vadd.f32 %v744_v12, %v684_v45  ;;  %vm829_vm1 = vcmp.eq.f32.partialorder %v1769_v10, inf  ;;  %v832_v42 = vand.u32 2147483648, %v1769_v10 }
  0xf5   :  { %vm831_vm2 = vcmp.eq.f32.partialorder %v1769_v10, 0.0 }
  0xf6   :  { %v1773_v22 = vadd.f32 %v785_v5, %v745_v62 }
  0xf7   :  { %v789_v58 = vpop.f32.mrf.mxu3 }
  0xf8   :  { %v646_v30 = vpop.f32.mrf.mxu0  ;;  %v810_v18 = vmul.f32 %v1773_v22, %v1773_v22 }
  0xf9   :  { %v689_v56 = vpop.f32.mrf.mxu1  ;;  %v647_v55 = vadd.f32 %v646_v30, %v594_v41 }
  0xfa   :  { %v1046_v60 = vpop.eup %1045  ;;  %v690_v0 = vadd.f32 %v689_v56, %v642_v50  ;;  %v748_v14 = vpop.f32.mrf.mxu2  ;;  %v813_v44 = vadd.f32 %v810_v18, %v809_v20 }
  0xfb   :  { %v823_v15 = vmul.f32 %v1046_v60, %v1769_v10 }
  0xfc   :  { %v749_v31 = vadd.f32 %v748_v14, %v690_v0 }
  0xfd   :  { %v824_v32 = vmul.f32 %v1046_v60, %v823_v15 }
  0xfe   :  { %v1777_v57 = vadd.f32 %v789_v58, %v749_v31 }
  0xff   :  { %v825_v46 = vmul.f32 0.5, %v824_v32  ;;  %v793_v16 = vpop.f32.mrf.mxu3 }
 0x100   :  { %v811_v28 = vmul.f32 %v1777_v57, %v1777_v57 }
 0x101   :  { %v826_v61 = vsub.f32 1.5, %v825_v46  ;;  %v695_v9 = vpop.f32.mrf.mxu1 }
 0x102   :  { %v696_v23 = vadd.f32 %v695_v9, %v647_v55  ;;  %v752_v63 = vpop.f32.mrf.mxu2  ;;  %v814_v13 = vadd.f32 %v813_v44, %v811_v28 }
 0x103   :  { %v827_v11 = vmul.f32 %v1046_v60, %v826_v61 }
 0x104   :  { %v753_v21 = vadd.f32 %v752_v63, %v696_v23 }
 0x105   :  { %v828_v40 = vmul.f32 %v827_v11, %v1769_v10 }
 0x106   :  { %v1788_v17 = vadd.f32 %v793_v16, %v753_v21 }
 0x107   :  { %v830_v48 = vsel %vm829_vm1, %v1769_v10, %v828_v40 }
 0x108   :  { %v833_v51 = vsel %vm831_vm2, %v832_v42, %v830_v48  ;;  %v812_v19 = vmul.f32 %v1788_v17, %v1788_v17 }
 0x109   :  { %v847_v53 = vadd.f32 1e-07, %v833_v51  ;;  %vm846_vm7 = vcmp.gt.f32.partialorder %v833_v51, 0.99999 }
 0x10a   :  { %v815_v24 = vadd.f32 %v814_v13, %v812_v19 }
 0x10b   :  { %1047 = vrcp.f32 %v847_v53  ;;  %v859_v4 = vand.u32 2147483648, %v847_v53  ;;  %v857_v6 = vand.u32 2147483647, %v847_v53  ;;  %vm853_vm4 = vweird.f32 %v847_v53 }
 0x10c   :  { %v816_v33 = vrot.slane %v815_v24, 4 }
 0x10d   :  { %v860_v12 = vor.u32 1.1754944e-38, %v859_v4  ;;  %vm858_vm6 = vcmp.eq.f32.partialorder %v857_v6, 8.507059e+37 }
 0x10e   :  { %v817_v26 = vadd.f32 %v816_v33, %v815_v24 }
 0x110   :  { %v818_v37 = vrot.slane %v817_v26, 2 }
 0x111   :  { %v1048_v54 = vpop.eup %1047 }
 0x112   :  { %v849_v36 = vmul.f32 %v1048_v54, %v847_v53  ;;  %v819_v1 = vadd.f32 %v818_v37, %v817_v26  ;;  %vm854_vm3 = vweird.f32 %v1048_v54 }
 0x113   :  { %vm855_vm5 = vmor %vm853_vm4, %vm854_vm3 }
 0x114   :  { %v850_v2 = vsub.f32 1.0, %v849_v36  ;;  %v820_v3 = vrot.slane %v819_v1, 1 }
 0x116   :  { %v851_v5 = vmul.f32 %v1048_v54, %v850_v2  ;;  %v821_v7 = vadd.f32 %v820_v3, %v819_v1 }
 0x118   :  { %v852_v8 = vadd.f32 %v1048_v54, %v851_v5  ;;  %1049 = vrsqrt.f32 %v821_v7  ;;  %vm841_vm8 = vcmp.eq.f32.partialorder %v821_v7, inf  ;;  %v844_v29 = vand.u32 2147483648, %v821_v7 }
 0x119   :  { %vm843_vm9 = vcmp.eq.f32.partialorder %v821_v7, 0.0 }
 0x11a   :  { %v856_v27 = vsel %vm855_vm5, %v1048_v54, %v852_v8 }
 0x11b   :  { %v861_v34 = vsel %vm858_vm6, %v860_v12, %v856_v27 }
 0x11c   :  { %v862_v35 = vmul.f32 0.99999, %v861_v34 }
 0x11e   :  { %v1050_v38 = vpop.eup %1049  ;;  %v863_v43 = vsel %vm846_vm7, %v862_v35, 1.0 }
 0x11f   :  { %v891_v45 = vmul.f32 %v863_v43, %v1765_v25  ;;  %v835_v49 = vmul.f32 %v1050_v38, %v821_v7  ;;  %v888_v50 = vmul.f32 %v863_v43, %v1753_v52  ;;  %v889_v56 = vmul.f32 %v863_v43, %v1755_v59 }
 0x120   :  { %v890_v58 = vmul.f32 %v863_v43, %v1761_v39  ;;  %v882_v39 = vmul.f32 %v863_v43, %v1769_v10 }
 0x121   :  { %v836_v60 = vmul.f32 %v1050_v38, %v835_v49 }
 0x122   :  { %v883_v63 = vmul.f32 %v882_v39, %v863_v43 }
 0x123   :  { %v837_v62 = vmul.f32 0.5, %v836_v60 }
 0x124   :  { %v884_v42 = vmax.f32 %v883_v63, 1e-05 }
 0x125   :  { %v838_v0 = vsub.f32 1.5, %v837_v62 }
 0x126   :  { %v914_v26 = vsub.f32 1.0, %v884_v42 }
 0x127   :  { %v839_v14 = vmul.f32 %v1050_v38, %v838_v0 }
 0x129   :  { %v840_v15 = vmul.f32 %v839_v14, %v821_v7 }
 0x12b   :  { %v842_v31 = vsel %vm841_vm8, %v821_v7, %v840_v15 }
 0x12c   :  { %v845_v32 = vsel %vm843_vm9, %v844_v29, %v842_v31 }
 0x12d   :  { %v865_v30 = vadd.f32 1e-07, %v845_v32  ;;  %vm864_vm14 = vcmp.gt.f32.partialorder %v845_v32, 0.99999 }
 0x12f   :  { %1051 = vrcp.f32 %v865_v30  ;;  %v877_v52 = vand.u32 2147483648, %v865_v30  ;;  %v875_v59 = vand.u32 2147483647, %v865_v30  ;;  %vm871_vm11 = vweird.f32 %v865_v30 }
 0x131   :  { %v878_v9 = vor.u32 1.1754944e-38, %v877_v52  ;;  %vm876_vm13 = vcmp.eq.f32.partialorder %v875_v59, 8.507059e+37 }
 0x135   :  { %v1052_v25 = vpop.eup %1051 }
 0x136   :  { %v867_v41 = vmul.f32 %v1052_v25, %v865_v30  ;;  %vm872_vm10 = vweird.f32 %v1052_v25 }
 0x137   :  { %vm873_vm12 = vmor %vm871_vm11, %vm872_vm10 }
 0x138   :  { %v868_v46 = vsub.f32 1.0, %v867_v41 }
 0x13a   :  { %v869_v55 = vmul.f32 %v1052_v25, %v868_v46 }
 0x13c   :  { %v870_v61 = vadd.f32 %v1052_v25, %v869_v55 }
 0x13e   :  { %v874_v18 = vsel %vm873_vm12, %v1052_v25, %v870_v61 }
 0x13f   :  { %v879_v23 = vsel %vm876_vm13, %v878_v9, %v874_v18 }
 0x140   :  { %v880_v11 = vmul.f32 0.99999, %v879_v23 }
 0x142   :  { %v881_v16 = vsel %vm864_vm14, %v880_v11, 1.0 }
 0x143   :  { %v885_v20 = vmul.f32 %v881_v16, %v821_v7  ;;  %v892_v28 = vmul.f32 %v881_v16, %v1775_v47  ;;  %v893_v21 = vmul.f32 %v881_v16, %v1773_v22  ;;  %v894_v40 = vmul.f32 %v881_v16, %v1777_v57 }
 0x144   :  { %v895_v10 = vmul.f32 %v881_v16, %v1788_v17 }
 0x145   :  { %v886_v44 = vmul.f32 %v885_v20, %v881_v16  ;;  %v896_v48 = vsub.f32 %v888_v50, %v892_v28  ;;  %v897_v51 = vsub.f32 %v889_v56, %v893_v21  ;;  %v898_v13 = vsub.f32 %v890_v58, %v894_v40 }
 0x146   :  { %v899_v19 = vsub.f32 %v891_v45, %v895_v10 }
 0x147   :  { %v887_v53 = vmax.f32 %v886_v44, 1e-05  ;;  %v900_v24 = vmul.f32 %v896_v48, %v896_v48  ;;  %v901_v33 = vmul.f32 %v897_v51, %v897_v51  ;;  %v902_v37 = vmul.f32 %v898_v13, %v898_v13 }
 0x148   :  { %v903_v47 = vmul.f32 %v899_v19, %v899_v19 }
 0x149   :  { %v904_v54 = vadd.f32 %v901_v33, %v900_v24  ;;  %v915_v36 = vsub.f32 1.0, %v887_v53 }
 0x14b   :  { %v905_v1 = vadd.f32 %v904_v54, %v902_v37  ;;  %v916_v22 = vmul.f32 %v915_v36, %v914_v26 }
 0x14d   :  { %v906_v2 = vadd.f32 %v905_v1, %v903_v47  ;;  %1053 = vrcp.f32 %v916_v22  ;;  %v928_v12 = vand.u32 2147483648, %v916_v22  ;;  %v926_v34 = vand.u32 2147483647, %v916_v22 }
 0x14e   :  { %vm922_vm0 = vweird.f32 %v916_v22 }
 0x14f   :  { %v907_v57 = vrot.slane %v906_v2, 4  ;;  %v929_v45 = vor.u32 1.1754944e-38, %v928_v12  ;;  %vm927_vm2 = vcmp.eq.f32.partialorder %v926_v34, 8.507059e+37 }
 0x151   :  { %v908_v3 = vadd.f32 %v907_v57, %v906_v2 }
 0x153   :  { %v1054_v17 = vpop.eup %1053  ;;  %v909_v4 = vrot.slane %v908_v3, 2 }
 0x154   :  { %v918_v5 = vmul.f32 %v1054_v17, %v916_v22  ;;  %vm923_vm15 = vweird.f32 %v1054_v17 }
 0x155   :  { %v910_v6 = vadd.f32 %v909_v4, %v908_v3  ;;  %vm924_vm1 = vmor %vm922_vm0, %vm923_vm15 }
 0x156   :  { %v919_v7 = vsub.f32 1.0, %v918_v5 }
 0x157   :  { %v911_v8 = vrot.slane %v910_v6, 1 }
 0x158   :  { %v920_v27 = vmul.f32 %v1054_v17, %v919_v7 }
 0x159   :  { %v912_v35 = vadd.f32 %v911_v8, %v910_v6 }
 0x15a   :  { %v921_v38 = vadd.f32 %v1054_v17, %v920_v27 }
 0x15b   :  { %v913_v43 = vmax.f32 %v912_v35, 1e-05 }
 0x15c   :  { %v925_v49 = vsel %vm924_vm1, %v1054_v17, %v921_v38 }
 0x15d   :  { %v930_v50 = vsel %vm927_vm2, %v929_v45, %v925_v49 }
 0x15e   :  { %v931_v56 = vmul.f32 %v930_v50, %v913_v43 }
 0x160   :  { %v932_v58 = vmul.f32 2.0, %v931_v56 }
 0x162   :  { %v933_v60 = vadd.f32 1.0, %v932_v58 }
 0x164   :  { %v934_v62 = vmul.f32 %v933_v60, %v933_v60 }
 0x166   :  { %v1034_v0 = vadd.f32 -1.0, %v934_v62 }
 0x168   :  { %1055 = vrsqrt.f32 %v1034_v0  ;;  %vm943_vm3 = vcmp.eq.f32.partialorder %v1034_v0, inf  ;;  %v946_v41 = vand.u32 2147483648, %v1034_v0  ;;  %vm945_vm4 = vcmp.eq.f32.partialorder %v1034_v0, 0.0 }
 0x16e   :  { %v1056_v14 = vpop.eup %1055 }
 0x16f   :  { %v937_v15 = vmul.f32 %v1056_v14, %v1034_v0 }
 0x171   :  { %v938_v29 = vmul.f32 %v1056_v14, %v937_v15 }
 0x173   :  { %v939_v31 = vmul.f32 0.5, %v938_v29 }
 0x175   :  { %v940_v32 = vsub.f32 1.5, %v939_v31 }
 0x177   :  { %v941_v30 = vmul.f32 %v1056_v14, %v940_v32 }
 0x179   :  { %v942_v25 = vmul.f32 %v1034_v0, %v941_v30 }
 0x17b   :  { %v944_v46 = vsel %vm943_vm3, %v1034_v0, %v942_v25 }
 0x17c   :  { %v947_v52 = vsel %vm945_vm4, %v946_v41, %v944_v46 }
 0x17d   :  { %v948_v55 = vadd.f32 %v947_v52, %v933_v60 }
 0x17f   :  { %1057 = vlog2.f32 %v948_v55 }
 0x185   :  { %v1058_v59 = vpop.eup %1057 }
 0x186   :  { %v950_v39 = vmul.f32 0.6931472, %v1058_v59 }
 0x188   :  { %951 = vst [vmem:[#allocation8] sm:$0x1] %v950_v39 }
 0x189   :  { %962 = dma.vmem_to_hbm [thread:$0]  %s958_s2, 16, %s960_s30, [#allocation4]  }
 0x18a   :  { %1159 = dma.done.wait [#allocation4], 16  }
 0x18b   :  { %1160 = vsyncadd [#allocation4], 4294967280 }
 0x18c   :  { %967 = vsyncpa [#allocation3], 1 }
 0x18d   :  { %968 = vsyncpa [#allocation6], 1 }
 0x18e   :  { %969 = vsyncpa [#allocation4], 1 }

</bundles_post_ra>
